<compile_context>
chip_gen: v5e
topology: v5e:2x2
jax: 0.10.0
libtpu: 0.0.40
codegen_flags: <defaults>
</compile_context>

<pallas_src>
import jax
import jax.numpy as jnp
from jax.experimental import pallas as pl
from jax.experimental.pallas import tpu as pltpu


def _round_up(x, m):
    return ((x + m - 1) // m) * m


def _leaky_relu(x, slope=0.2):
    return jnp.where(x > 0, x, slope * x)


def _mlp_d_img_kernel(x_ref, w0_ref, b0_ref, w1_ref, b1_ref, w2_ref, b2_ref, o_ref):
    # x arrives f32 from HBM; cast to bf16 in-kernel (hidden under DMA),
    # accumulate on the MXU in f32, keep the whole epilogue in f32.
    x = x_ref[...].astype(jnp.bfloat16)                              # (TB, nx)

    h = jnp.dot(x, w0_ref[...], preferred_element_type=jnp.float32) + b0_ref[...]
    h = _leaky_relu(h)                                               # f32

    h = jnp.dot(h.astype(jnp.bfloat16), w1_ref[...],
                preferred_element_type=jnp.float32) + b1_ref[...]
    h = _leaky_relu(h)                                               # f32

    y = jnp.dot(h.astype(jnp.bfloat16), w2_ref[...],
                preferred_element_type=jnp.float32) + b2_ref[...]
    # sigmoid out-activation (exp/recip live on the EUP slot); store bf16.
    o_ref[...] = jax.nn.sigmoid(y).astype(o_ref.dtype)


def _vmem_budget_bytes():
    """Generation-aware scoped-VMEM budget for the pallas_call."""
    try:
        kind = jax.devices()[0].device_kind.lower()
    except Exception:
        kind = ""
    if "v7" in kind:
        return 48 * 1024 * 1024   # v7x: 64 MiB physical -> leave headroom
    if "v6" in kind:
        return 96 * 1024 * 1024   # v6e: 128 MiB physical
    if "v5" in kind:
        return 64 * 1024 * 1024   # v5e: 128 MiB physical
    return 32 * 1024 * 1024       # unknown / older: conservative default


def _pick_tb(B, nx, width, out_pad, vmem_budget, tb_max):
    """Largest batch tile (multiple of 16) that fits the VMEM budget."""
    # Resident weights / biases (count 2x: the pipeline may double-buffer them).
    fixed = 2 * ((nx * width + width * width + width * out_pad) * 2
                 + (2 * width + out_pad) * 4)
    # Per batch row: double-buffered f32 x tile + double-buffered bf16 out tile
    # + f32 intermediates (hidden activations / accumulators).
    per_row = 2 * nx * 4 + 2 * out_pad * 2 + 3 * (width + out_pad) * 4
    headroom = 8 * 1024 * 1024    # compiler scratch / spill margin
    avail = max(vmem_budget - fixed - headroom, per_row * 16)
    tb = (avail // per_row) // 16 * 16
    tb = int(max(16, min(tb, tb_max)))
    if B <= 16:
        # Block equals the full batch dim: always layout-legal, single tile.
        return B
    # Guarantee >= 2 batch tiles so the "parallel" axis can shard over v7x's
    # two TensorCores (and restore pipelining overlap per core).
    half = _round_up(-(-B // 2), 16)
    return max(16, min(tb, half))


def mlp_d_img_forward(x_nchw, params, *, tb_max=2048):
    """x_nchw: (B, C, H, W) float32. params: dict of transposed weights / biases."""
    B = x_nchw.shape[0]
    nx = x_nchw.shape[1] * x_nchw.shape[2] * x_nchw.shape[3]
    x = x_nchw.reshape(B, nx)                 # same element order as torch .view(); stays f32

    w0 = params["w0"].astype(jnp.bfloat16)
    b0 = params["b0"].astype(jnp.float32)
    w1 = params["w1"].astype(jnp.bfloat16)
    b1 = params["b1"].astype(jnp.float32)

    width = w0.shape[1]
    outdim = params["w2"].shape[1]
    # Pad the output feature dim to a multiple of 128 lanes -> lane-dense store.
    out_pad = _round_up(outdim, 128)
    w2 = jnp.pad(params["w2"], ((0, 0), (0, out_pad - outdim))).astype(jnp.bfloat16)
    b2 = jnp.pad(params["b2"], ((0, 0), (0, out_pad - outdim))).astype(jnp.float32)

    # Note: if nx % 128 != 0 the x block's last dim equals the full array dim,
    # which is legal (possibly with masked loads); we deliberately do NOT pad x
    # at runtime since that would cost an extra HBM pass over the big operand.

    vmem_budget = _vmem_budget_bytes()
    TB = _pick_tb(B, nx, width, out_pad, vmem_budget, tb_max)
    grid = (pl.cdiv(B, TB),)                  # ragged last block handled by Pallas

    flops = 2 * B * (nx * width + width * width + width * out_pad)
    bytes_accessed = (B * nx * 4                           # streamed x (f32)
                      + (nx * width + width * width + width * out_pad) * 2  # bf16 weights
                      + (2 * width + out_pad) * 4          # f32 biases
                      + B * out_pad * 2)                   # bf16 output
    cost = pl.CostEstimate(flops=flops,
                           transcendentals=B * out_pad,
                           bytes_accessed=bytes_accessed)

    out = pl.pallas_call(
        _mlp_d_img_kernel,
        out_shape=jax.ShapeDtypeStruct((B, out_pad), jnp.bfloat16),
        grid=grid,
        in_specs=[
            pl.BlockSpec((TB, nx), lambda i: (i, 0)),        # streamed x tiles (f32)
            pl.BlockSpec((nx, width), lambda i: (0, 0)),     # resident weights
            pl.BlockSpec((1, width), lambda i: (0, 0)),
            pl.BlockSpec((width, width), lambda i: (0, 0)),
            pl.BlockSpec((1, width), lambda i: (0, 0)),
            pl.BlockSpec((width, out_pad), lambda i: (0, 0)),
            pl.BlockSpec((1, out_pad), lambda i: (0, 0)),
        ],
        out_specs=pl.BlockSpec((TB, out_pad), lambda i: (i, 0)),
        compiler_params=pltpu.CompilerParams(
            dimension_semantics=("parallel",),   # v7x: shard batch tiles over 2 TCs
            vmem_limit_bytes=vmem_budget,
        ),
        cost_estimate=cost,
    )(x, w0, b0, w1, b1, w2, b2)

    return out[:B, :outdim].astype(jnp.float32)


def init_params(key, nx, width, outdim):
    """Deterministic synthetic parameters (not a checkpoint load).

    Stored as (in, out) so the kernel does x @ W + b; biases are (1, out) for
    clean 2-D broadcasting inside the kernel.
    """
    k0, k1, k2, k3, k4, k5 = jax.random.split(key, 6)
    scale0 = 1.0 / jnp.sqrt(nx)
    scale1 = 1.0 / jnp.sqrt(width)
    params = {
        "w0": jax.random.uniform(k0, (nx, width), jnp.float32, -scale0, scale0),
        "b0": jax.random.uniform(k1, (1, width), jnp.float32, -scale0, scale0),
        "w1": jax.random.uniform(k2, (width, width), jnp.float32, -scale1, scale1),
        "b1": jax.random.uniform(k3, (1, width), jnp.float32, -scale1, scale1),
        "w2": jax.random.uniform(k4, (width, outdim), jnp.float32, -scale1, scale1),
        "b2": jax.random.uniform(k5, (1, outdim), jnp.float32, -scale1, scale1),
    }
    return params


def reference_forward_f32(x_nchw, params):
    """Pure-JAX f32 reference (matches the PyTorch module numerically)."""
    B = x_nchw.shape[0]
    x = x_nchw.reshape(B, -1)
    h = x @ params["w0"] + params["b0"]
    h = jnp.where(h > 0, h, 0.2 * h)
    h = h @ params["w1"] + params["b1"]
    h = jnp.where(h > 0, h, 0.2 * h)
    y = h @ params["w2"] + params["b2"]
    return jax.nn.sigmoid(y)


def reference_forward_bf16(x_nchw, params):
    """Pure-JAX reference applying the same bf16 casts as the kernel."""
    B = x_nchw.shape[0]
    x = x_nchw.reshape(B, -1).astype(jnp.bfloat16)
    w0 = params["w0"].astype(jnp.bfloat16)
    w1 = params["w1"].astype(jnp.bfloat16)
    w2 = params["w2"].astype(jnp.bfloat16)
    h = jnp.dot(x, w0, preferred_element_type=jnp.float32) + params["b0"]
    h = jnp.where(h > 0, h, 0.2 * h)
    h = jnp.dot(h.astype(jnp.bfloat16), w1, preferred_element_type=jnp.float32) + params["b1"]
    h = jnp.where(h > 0, h, 0.2 * h)
    y = jnp.dot(h.astype(jnp.bfloat16), w2, preferred_element_type=jnp.float32) + params["b2"]
    return jax.nn.sigmoid(y)


if __name__ == "__main__":
    # Small shapes consistent with the module: isize=16, nc=4 -> nx = 4*16*16 = 1024
    B, C, H, W = 2, 4, 16, 16
    width, outdim = 128, 1

    key = jax.random.PRNGKey(0)
    kx, kp = jax.random.split(key)
    x = jax.random.normal(kx, (B, C, H, W), dtype=jnp.float32)
    params = init_params(kp, C * H * W, width, outdim)

    out = mlp_d_img_forward(x, params)
    out = jax.block_until_ready(out)
    assert out.shape == (B, outdim), out.shape

    # Check against a reference with matching bf16 matmul casts (kernel output
    # is additionally rounded to bf16 on store -> ~2e-3 quantization on [0,1]).
    ref_bf16 = reference_forward_bf16(x, params)
    assert jnp.allclose(out, ref_bf16, atol=6e-3, rtol=1e-2), (out, ref_bf16)

    # Loose check against the exact-f32 (PyTorch-equivalent) reference:
    # only difference is bf16 matmul operands / bf16 output store.
    ref_f32 = reference_forward_f32(x, params)
    assert jnp.allclose(out, ref_f32, atol=3e-2, rtol=3e-2), (out, ref_f32)

    print("KERNEL_OK")
</pallas_src>

<mosaic_0001>
module attributes {stable_mosaic.version = 11 : i64} {
  func.func @_mlp_d_img_kernel(%arg0: i32, %arg1: memref<2x1024xf32, #tpu.memory_space<vmem>>, %arg2: memref<1024x128xbf16, #tpu.memory_space<vmem>>, %arg3: memref<1x128xf32, #tpu.memory_space<vmem>>, %arg4: memref<128x128xbf16, #tpu.memory_space<vmem>>, %arg5: memref<1x128xf32, #tpu.memory_space<vmem>>, %arg6: memref<128x128xbf16, #tpu.memory_space<vmem>>, %arg7: memref<1x128xf32, #tpu.memory_space<vmem>>, %arg8: memref<2x128xbf16, #tpu.memory_space<vmem>>) attributes {dimension_semantics = [#tpu.dimension_semantics<parallel>], iteration_bounds = array<i64: 1>, scalar_prefetch = 0 : i64, scratch_operands = 0 : i64, tpu.core_type = #tpu.core_type<tc>, window_params = [{transform_indices = @transform_0, window_bounds = array<i64: 2, 1024>}, {pipeline_mode = #tpu.pipeline_mode<synchronous>, transform_indices = @transform_1, window_bounds = array<i64: 1024, 128>}, {pipeline_mode = #tpu.pipeline_mode<synchronous>, transform_indices = @transform_2, window_bounds = array<i64: 1, 128>}, {pipeline_mode = #tpu.pipeline_mode<synchronous>, transform_indices = @transform_3, window_bounds = array<i64: 128, 128>}, {pipeline_mode = #tpu.pipeline_mode<synchronous>, transform_indices = @transform_4, window_bounds = array<i64: 1, 128>}, {pipeline_mode = #tpu.pipeline_mode<synchronous>, transform_indices = @transform_5, window_bounds = array<i64: 128, 128>}, {pipeline_mode = #tpu.pipeline_mode<synchronous>, transform_indices = @transform_6, window_bounds = array<i64: 1, 128>}, {transform_indices = @transform_7, window_bounds = array<i64: 2, 128>}]} {
    %c0 = arith.constant 0 : index
    %c0_0 = arith.constant 0 : index
    %0 = vector.load %arg1[%c0, %c0_0] : memref<2x1024xf32, #tpu.memory_space<vmem>>, vector<2x1024xf32>
    %1 = arith.truncf %0 : vector<2x1024xf32> to vector<2x1024xbf16>
    %c0_1 = arith.constant 0 : index
    %c0_2 = arith.constant 0 : index
    %2 = vector.load %arg2[%c0_1, %c0_2] : memref<1024x128xbf16, #tpu.memory_space<vmem>>, vector<1024x128xbf16>
    %cst = arith.constant dense<0.000000e+00> : vector<2x128xf32>
    %3 = tpu.matmul %1, %2, %cst {dimension_numbers = #tpu.dot_dimension_numbers<[1], [0], [0], [1], [0, 0, 1, 1], [], []>} : vector<2x1024xbf16>, vector<1024x128xbf16>, vector<2x128xf32> -> vector<2x128xf32>
    %c0_3 = arith.constant 0 : index
    %c0_4 = arith.constant 0 : index
    %4 = vector.load %arg3[%c0_3, %c0_4] : memref<1x128xf32, #tpu.memory_space<vmem>>, vector<1x128xf32>
    %5 = vector.broadcast %4 : vector<1x128xf32> to vector<2x128xf32>
    %6 = arith.addf %3, %5 : vector<2x128xf32>
    %cst_5 = arith.constant 0.000000e+00 : f32
    %7 = vector.broadcast %cst_5 : f32 to vector<2x128xf32>
    %8 = arith.cmpf ogt, %6, %7 : vector<2x128xf32>
    %cst_6 = arith.constant 2.000000e-01 : f32
    %9 = vector.broadcast %cst_6 : f32 to vector<2x128xf32>
    %10 = arith.mulf %9, %6 : vector<2x128xf32>
    %11 = arith.select %8, %6, %10 : vector<2x128xi1>, vector<2x128xf32>
    %12 = arith.truncf %11 : vector<2x128xf32> to vector<2x128xbf16>
    %c0_7 = arith.constant 0 : index
    %c0_8 = arith.constant 0 : index
    %13 = vector.load %arg4[%c0_7, %c0_8] : memref<128x128xbf16, #tpu.memory_space<vmem>>, vector<128x128xbf16>
    %cst_9 = arith.constant dense<0.000000e+00> : vector<2x128xf32>
    %14 = tpu.matmul %12, %13, %cst_9 {dimension_numbers = #tpu.dot_dimension_numbers<[1], [0], [0], [1], [0, 0, 1, 1], [], []>} : vector<2x128xbf16>, vector<128x128xbf16>, vector<2x128xf32> -> vector<2x128xf32>
    %c0_10 = arith.constant 0 : index
    %c0_11 = arith.constant 0 : index
    %15 = vector.load %arg5[%c0_10, %c0_11] : memref<1x128xf32, #tpu.memory_space<vmem>>, vector<1x128xf32>
    %16 = vector.broadcast %15 : vector<1x128xf32> to vector<2x128xf32>
    %17 = arith.addf %14, %16 : vector<2x128xf32>
    %cst_12 = arith.constant 0.000000e+00 : f32
    %18 = vector.broadcast %cst_12 : f32 to vector<2x128xf32>
    %19 = arith.cmpf ogt, %17, %18 : vector<2x128xf32>
    %cst_13 = arith.constant 2.000000e-01 : f32
    %20 = vector.broadcast %cst_13 : f32 to vector<2x128xf32>
    %21 = arith.mulf %20, %17 : vector<2x128xf32>
    %22 = arith.select %19, %17, %21 : vector<2x128xi1>, vector<2x128xf32>
    %23 = arith.truncf %22 : vector<2x128xf32> to vector<2x128xbf16>
    %c0_14 = arith.constant 0 : index
    %c0_15 = arith.constant 0 : index
    %24 = vector.load %arg6[%c0_14, %c0_15] : memref<128x128xbf16, #tpu.memory_space<vmem>>, vector<128x128xbf16>
    %cst_16 = arith.constant dense<0.000000e+00> : vector<2x128xf32>
    %25 = tpu.matmul %23, %24, %cst_16 {dimension_numbers = #tpu.dot_dimension_numbers<[1], [0], [0], [1], [0, 0, 1, 1], [], []>} : vector<2x128xbf16>, vector<128x128xbf16>, vector<2x128xf32> -> vector<2x128xf32>
    %c0_17 = arith.constant 0 : index
    %c0_18 = arith.constant 0 : index
    %26 = vector.load %arg7[%c0_17, %c0_18] : memref<1x128xf32, #tpu.memory_space<vmem>>, vector<1x128xf32>
    %27 = vector.broadcast %26 : vector<1x128xf32> to vector<2x128xf32>
    %28 = arith.addf %25, %27 : vector<2x128xf32>
    %29 = arith.negf %28 : vector<2x128xf32>
    %30 = math.exp %29 : vector<2x128xf32>
    %cst_19 = arith.constant 1.000000e+00 : f32
    %31 = vector.broadcast %cst_19 : f32 to vector<2x128xf32>
    %32 = arith.addf %31, %30 : vector<2x128xf32>
    %33 = arith.divf %31, %32 : vector<2x128xf32>
    %34 = arith.truncf %33 : vector<2x128xf32> to vector<2x128xbf16>
    %c0_20 = arith.constant 0 : index
    %c0_21 = arith.constant 0 : index
    %35 = vector.load %arg8[%c0_20, %c0_21] : memref<2x128xbf16, #tpu.memory_space<vmem>>, vector<2x128xbf16>
    tpu.vector_store %arg8[%c0_20, %c0_21], %34 {strides = array<i32>} : memref<2x128xbf16, #tpu.memory_space<vmem>>, vector<2x128xbf16>,
    return
  }
  func.func @transform_0(%arg0: i32) -> (i32, i32) {
    %c0_i32 = arith.constant 0 : i32
    %c0_i32_0 = arith.constant 0 : i32
    return %arg0, %c0_i32 : i32, i32
  }
  func.func @transform_1(%arg0: i32) -> (i32, i32) {
    %c0_i32 = arith.constant 0 : i32
    %c0_i32_0 = arith.constant 0 : i32
    %c0_i32_1 = arith.constant 0 : i32
    return %c0_i32, %c0_i32_0 : i32, i32
  }
  func.func @transform_2(%arg0: i32) -> (i32, i32) {
    %c0_i32 = arith.constant 0 : i32
    %c0_i32_0 = arith.constant 0 : i32
    %c0_i32_1 = arith.constant 0 : i32
    return %c0_i32, %c0_i32_0 : i32, i32
  }
  func.func @transform_3(%arg0: i32) -> (i32, i32) {
    %c0_i32 = arith.constant 0 : i32
    %c0_i32_0 = arith.constant 0 : i32
    %c0_i32_1 = arith.constant 0 : i32
    return %c0_i32, %c0_i32_0 : i32, i32
  }
  func.func @transform_4(%arg0: i32) -> (i32, i32) {
    %c0_i32 = arith.constant 0 : i32
    %c0_i32_0 = arith.constant 0 : i32
    %c0_i32_1 = arith.constant 0 : i32
    return %c0_i32, %c0_i32_0 : i32, i32
  }
  func.func @transform_5(%arg0: i32) -> (i32, i32) {
    %c0_i32 = arith.constant 0 : i32
    %c0_i32_0 = arith.constant 0 : i32
    %c0_i32_1 = arith.constant 0 : i32
    return %c0_i32, %c0_i32_0 : i32, i32
  }
  func.func @transform_6(%arg0: i32) -> (i32, i32) {
    %c0_i32 = arith.constant 0 : i32
    %c0_i32_0 = arith.constant 0 : i32
    %c0_i32_1 = arith.constant 0 : i32
    return %c0_i32, %c0_i32_0 : i32, i32
  }
  func.func @transform_7(%arg0: i32) -> (i32, i32) {
    %c0_i32 = arith.constant 0 : i32
    %c0_i32_0 = arith.constant 0 : i32
    return %arg0, %c0_i32 : i32, i32
  }
}

</mosaic_0001>

<bundles_post_ra>
// kernel: tpu_custom_call.1
= control target key start
LH: loop header
LB: loop body
LE: loop exit
PB: predicated region body
PF: predicated region fallthrough
CT: control target
= control target key end

     0   :  { %12 = vsyncpa [#allocation3], 0  ;;  %s1563_s0 = inlined_call_operand.hbm [shape: f32[2,1024], index: 0, kind: input, shape index: {}]   ;;  %s1564_s1 = inlined_call_operand.hbm [shape: bf16[1024,128], index: 1, kind: input, shape index: {}]   ;;  %s1565_s2 = inlined_call_operand.vmem [shape: f32[1,128], index: 2, kind: input, shape index: {}]   ;;  %s1566_s3 = inlined_call_operand.hbm [shape: bf16[128,128], index: 3, kind: input, shape index: {}]   ;;  %s1567_s4 = inlined_call_operand.vmem [shape: f32[1,128], index: 4, kind: input, shape index: {}]   ;;  %s1568_s5 = inlined_call_operand.hbm [shape: bf16[128,128], index: 5, kind: input, shape index: {}]   ;;  %s1569_s6 = inlined_call_operand.vmem [shape: f32[1,128], index: 6, kind: input, shape index: {}]   ;;  %s1570_s7 = inlined_call_operand.hbm [shape: bf16[2,128], index: 7, kind: output, shape index: {}]  }
   0x1   :  { %13 = vsyncpa [#allocation6], 0 }
   0x2   :  { %14 = vsyncpa [#allocation9], 0  ;;  %s31_s26 = sshll.u32 %s1564_s1, 4  ;;  %s32_s26 = int_to_ptr.hbm [resolvable:$true] %s31_s26 }
   0x3   :  { %15 = vsyncpa [#allocation4], 0  ;;  %s1492_s27 = smov [#allocation5]   ;;  %s21_s8 = sshll.u32 %s1563_s0, 4  ;;  %s22_s8 = int_to_ptr.hbm [resolvable:$true] %s21_s8 }
   0x4   :  { %s33_s28 = sshll.u32 %s1492_s27, 4  ;;  %s1493_s9 = smov 64   ;;  %s34_s28 = int_to_ptr.vmem [resolvable:$true] %s33_s28 }
   0x5   :  { %s1494_s10 = smov 4   ;;  %s1495_s11 = smov [#allocation2]  }
   0x6   :  { %39 = dma.hbm_to_vmem [thread:$0]  %s32_s26, 8192, %s34_s28, [#allocation6], %s1493_s9, %s1493_s9, %s1494_s10  }
   0x7   :  { %s23_s12 = sshll.u32 %s1495_s11, 4  ;;  %s46_s15 = sshll.u32 %s1566_s3, 4  ;;  %s24_s12 = int_to_ptr.vmem [resolvable:$true] %s23_s12  ;;  %s47_s15 = int_to_ptr.hbm [resolvable:$true] %s46_s15 }
   0x8   :  { %26 = dma.hbm_to_vmem [thread:$0]  %s22_s8, 256, %s24_s12, [#allocation3]  }
   0x9   :  { %s61_s17 = sshll.u32 %s1568_s5, 4  ;;  %s1496_s18 = smov [#allocation7]   ;;  %s62_s17 = int_to_ptr.hbm [resolvable:$true] %s61_s17 }
   0xa   :  { %s48_s19 = sshll.u32 %s1496_s18, 4  ;;  %s1497_s0 = smov [#allocation8]   ;;  %s49_s19 = int_to_ptr.vmem [resolvable:$true] %s48_s19 }
   0xb   :  { %54 = dma.hbm_to_vmem [thread:$0]  %s47_s15, 1024, %s49_s19, [#allocation6], %s1493_s9, %s1493_s9, %s1494_s10  }
   0xc   :  { %s63_s20 = sshll.u32 %s1497_s0, 4  ;;  %s64_s20 = int_to_ptr.vmem [resolvable:$true] %s63_s20 }
   0xd   :  { %69 = dma.hbm_to_vmem [thread:$0]  %s62_s17, 1024, %s64_s20, [#allocation9], %s1493_s9, %s1493_s9, %s1494_s10  }
   0xe   :  { %1484 = dma.done.wait [#allocation3], 256  }
   0xf   :  { %1485 = vsyncadd [#allocation3], 4294967040 }
  0x10   :  { %1486 = dma.done.wait [#allocation6], 9216  }
  0x11   :  { %1487 = vsyncadd [#allocation6], 4294958080 }
  0x12   :  { %1488 = dma.done.wait [#allocation9], 1024  }
  0x13   :  { %1489 = vsyncadd [#allocation9], 4294966272  ;;  %v1277_v0 = vld [vmem:[#allocation5 + $0x38] sm:$0xff]  ;;  %v1276_v4 = vld [vmem:[#allocation5 + $0x30] sm:$0xff]  ;;  %s937_s26 = sshll.u32 %s1570_s7, 4  ;;  %s938_s26 = int_to_ptr.hbm [resolvable:$true] %s937_s26 }
  0x14   :  { %v1285_v1 = vld [vmem:[#allocation5 + $0x78] sm:$0xff]  ;;  %635 = vmatpush.bf16.msra.mxu0 %v1277_v0  ;;  %v1284_v5 = vld [vmem:[#allocation5 + $0x70] sm:$0xff]  ;;  %v1275_v8 = vld [vmem:[#allocation5 + $0x28] sm:$0xff] }
  0x15   :  { %v1293_v2 = vld [vmem:[#allocation5 + $0xb8] sm:$0xff]  ;;  %648 = vmatpush.bf16.msra.mxu1 %v1285_v1  ;;  %v1292_v6 = vld [vmem:[#allocation5 + $0xb0] sm:$0xff]  ;;  %v1283_v9 = vld [vmem:[#allocation5 + $0x68] sm:$0xff] }
  0x16   :  { %v1301_v3 = vld [vmem:[#allocation5 + $0xf8] sm:$0xff]  ;;  %661 = vmatpush.bf16.msra.mxu2 %v1293_v2  ;;  %v1300_v7 = vld [vmem:[#allocation5 + $0xf0] sm:$0xff]  ;;  %v1291_v10 = vld [vmem:[#allocation5 + $0xa8] sm:$0xff] }
  0x17   :  { %674 = vmatpush.bf16.msra.mxu3 %v1301_v3  ;;  %v1299_v11 = vld [vmem:[#allocation5 + $0xe8] sm:$0xff]  ;;  %v1274_v12 = vld [vmem:[#allocation5 + $0x20] sm:$0xff]  ;;  %v88_v16 = vld [vmem:[#allocation2] sm:$0xff] }
  0x18   :  { %636 = vmatpush.bf16.msra.mxu0 %v1276_v4  ;;  %v1282_v13 = vld [vmem:[#allocation5 + $0x60] sm:$0xff]  ;;  %v1273_v17 = vld [vmem:[#allocation5 + $0x18] sm:$0xff]  ;;  %92 = vst [vmem:[#allocation1] ss:$4 sm:$0xff] %v88_v16  ;;  %v1272_v21 = vld [vmem:[#allocation5 + $0x10] sm:$0xff] }
  0x19   :  { %649 = vmatpush.bf16.msra.mxu1 %v1284_v5  ;;  %v1290_v14 = vld [vmem:[#allocation5 + $0xa0] sm:$0xff]  ;;  %v1281_v18 = vld [vmem:[#allocation5 + $0x58] sm:$0xff]  ;;  %v1280_v22 = vld [vmem:[#allocation5 + $0x50] sm:$0xff] }
  0x1a   :  { %662 = vmatpush.bf16.msra.mxu2 %v1292_v6  ;;  %v1298_v15 = vld [vmem:[#allocation5 + $0xe0] sm:$0xff]  ;;  %v1289_v19 = vld [vmem:[#allocation5 + $0x98] sm:$0xff]  ;;  %v1288_v23 = vld [vmem:[#allocation5 + $0x90] sm:$0xff] }
  0x1b   :  { %675 = vmatpush.bf16.msra.mxu3 %v1300_v7  ;;  %v1297_v20 = vld [vmem:[#allocation5 + $0xd8] sm:$0xff]  ;;  %v1296_v24 = vld [vmem:[#allocation5 + $0xd0] sm:$0xff]  ;;  %v1271_v25 = vld [vmem:[#allocation5 + $0x8] sm:$0xff] }
  0x1c   :  { %637 = vmatpush.bf16.msra.mxu0 %v1275_v8  ;;  %v1279_v26 = vld [vmem:[#allocation5 + $0x48] sm:$0xff]  ;;  %v89_v29 = vld [vmem:[#allocation2 + $0x8] sm:$0xff]  ;;  %v1270_v30 = vld [vmem:[#allocation5] sm:$0xff] }
  0x1d   :  { %650 = vmatpush.bf16.msra.mxu1 %v1283_v9  ;;  %v1287_v27 = vld [vmem:[#allocation5 + $0x88] sm:$0xff]  ;;  %v1278_v31 = vld [vmem:[#allocation5 + $0x40] sm:$0xff]  ;;  %94 = vst [vmem:[#allocation1 + $0x20] ss:$4 sm:$0xff] %v89_v29  ;;  %v1309_v34 = vld [vmem:[#allocation5 + $0x138] sm:$0xff] }
  0x1e   :  { %663 = vmatpush.bf16.msra.mxu2 %v1291_v10  ;;  %v1295_v28 = vld [vmem:[#allocation5 + $0xc8] sm:$0xff]  ;;  %v1286_v32 = vld [vmem:[#allocation5 + $0x80] sm:$0xff]  ;;  %v1317_v35 = vld [vmem:[#allocation5 + $0x178] sm:$0xff] }
  0x1f   :  { %676 = vmatpush.bf16.msra.mxu3 %v1299_v11  ;;  %v1294_v33 = vld [vmem:[#allocation5 + $0xc0] sm:$0xff]  ;;  %v97_v36 = vld.sshfl [vmem:[#allocation1 + $0x10] sm:$0xff pattern:$0x73625140]  ;;  %v1308_v46 = vld [vmem:[#allocation5 + $0x130] sm:$0xff] }
  0x20   :  { %638 = vmatpush.bf16.msra.mxu0 %v1274_v12  ;;  %v95_v37 = vld.sshfl [vmem:[#allocation1] sm:$0xff pattern:$0x73625140]  ;;  %v98_v38 = vld.sshfl [vmem:[#allocation1 + $0x18] sm:$0xff pattern:$0x73625140]  ;;  %v113_v42 = vpack.c.bf16 %v97_v36, %v97_v36 }
  0x21   :  { %651 = vmatpush.bf16.msra.mxu1 %v1282_v13  ;;  %v96_v39 = vld.sshfl [vmem:[#allocation1 + $0x8] sm:$0xff pattern:$0x73625140]  ;;  %v1325_v40 = vld [vmem:[#allocation5 + $0x1b8] sm:$0xff]  ;;  %v111_v43 = vpack.c.bf16 %v95_v37, %v95_v37  ;;  %v114_v44 = vpack.c.bf16 %v98_v38, %v98_v38  ;;  %v1307_v50 = vld [vmem:[#allocation5 + $0x128] sm:$0xff] }
  0x22   :  { %664 = vmatpush.bf16.msra.mxu2 %v1290_v14  ;;  %v1333_v41 = vld [vmem:[#allocation5 + $0x1f8] sm:$0xff]  ;;  %v112_v45 = vpack.c.bf16 %v96_v39, %v96_v39  ;;  %v1316_v47 = vld [vmem:[#allocation5 + $0x170] sm:$0xff]  ;;  %v1315_v51 = vld [vmem:[#allocation5 + $0x168] sm:$0xff] }
  0x23   :  { %677 = vmatpush.bf16.msra.mxu3 %v1298_v15  ;;  %v1324_v48 = vld [vmem:[#allocation5 + $0x1b0] sm:$0xff]  ;;  %v1323_v52 = vld [vmem:[#allocation5 + $0x1a8] sm:$0xff]  ;;  %v1306_v54 = vld [vmem:[#allocation5 + $0x120] sm:$0xff] }
  0x24   :  { %639 = vmatpush.bf16.msra.mxu0 %v1273_v17  ;;  %v1332_v49 = vld [vmem:[#allocation5 + $0x1f0] sm:$0xff]  ;;  %v1331_v53 = vld [vmem:[#allocation5 + $0x1e8] sm:$0xff]  ;;  %v1314_v55 = vld [vmem:[#allocation5 + $0x160] sm:$0xff] }
  0x25   :  { %652 = vmatpush.bf16.msra.mxu1 %v1281_v18  ;;  %v1322_v56 = vld [vmem:[#allocation5 + $0x1a0] sm:$0xff]  ;;  %v1305_v58 = vld [vmem:[#allocation5 + $0x118] sm:$0xff]  ;;  %v1304_v62 = vld [vmem:[#allocation5 + $0x110] sm:$0xff] }
  0x26   :  { %665 = vmatpush.bf16.msra.mxu2 %v1289_v19  ;;  %v1330_v57 = vld [vmem:[#allocation5 + $0x1e0] sm:$0xff]  ;;  %v1313_v59 = vld [vmem:[#allocation5 + $0x158] sm:$0xff]  ;;  %v1312_v63 = vld [vmem:[#allocation5 + $0x150] sm:$0xff] }
  0x27   :  { %678 = vmatpush.bf16.msra.mxu3 %v1297_v20  ;;  %v1321_v60 = vld [vmem:[#allocation5 + $0x198] sm:$0xff]  ;;  %v1320_v0 = vld [vmem:[#allocation5 + $0x190] sm:$0xff]  ;;  %v1303_v2 = vld [vmem:[#allocation5 + $0x108] sm:$0xff] }
  0x28   :  { %640 = vmatpush.bf16.msra.mxu0 %v1272_v21  ;;  %v1329_v61 = vld [vmem:[#allocation5 + $0x1d8] sm:$0xff]  ;;  %v1328_v1 = vld [vmem:[#allocation5 + $0x1d0] sm:$0xff]  ;;  %v1311_v3 = vld [vmem:[#allocation5 + $0x148] sm:$0xff] }
  0x29   :  { %653 = vmatpush.bf16.msra.mxu1 %v1280_v22  ;;  %v1319_v4 = vld [vmem:[#allocation5 + $0x188] sm:$0xff]  ;;  %v1302_v6 = vld [vmem:[#allocation5 + $0x100] sm:$0xff]  ;;  %v100_v11 = vld.sshfl [vmem:[#allocation1 + $0x28] sm:$0xff pattern:$0x73625140] }
  0x2a   :  { %666 = vmatpush.bf16.msra.mxu2 %v1288_v23  ;;  %v1327_v5 = vld [vmem:[#allocation5 + $0x1c8] sm:$0xff]  ;;  %v1310_v7 = vld [vmem:[#allocation5 + $0x140] sm:$0xff]  ;;  %v101_v12 = vld.sshfl [vmem:[#allocation1 + $0x30] sm:$0xff pattern:$0x73625140]  ;;  %v116_v15 = vpack.c.bf16 %v100_v11, %v100_v11 }
  0x2b   :  { %679 = vmatpush.bf16.msra.mxu3 %v1296_v24  ;;  %v1318_v8 = vld [vmem:[#allocation5 + $0x180] sm:$0xff]  ;;  %v99_v10 = vld.sshfl [vmem:[#allocation1 + $0x20] sm:$0xff pattern:$0x73625140]  ;;  %v117_v16 = vpack.c.bf16 %v101_v12, %v101_v12  ;;  %v1341_v18 = vld [vmem:[#allocation7 + $0x38] sm:$0xff] }
  0x2c   :  { %641 = vmatpush.bf16.msra.mxu0 %v1271_v25  ;;  %v1326_v9 = vld [vmem:[#allocation5 + $0x1c0] sm:$0xff]  ;;  %v115_v14 = vpack.c.bf16 %v99_v10, %v99_v10  ;;  %v1340_v19 = vld [vmem:[#allocation7 + $0x30] sm:$0xff]  ;;  %v1339_v20 = vld [vmem:[#allocation7 + $0x28] sm:$0xff] }
  0x2d   :  { %654 = vmatpush.bf16.msra.mxu1 %v1279_v26  ;;  %v102_v13 = vld.sshfl [vmem:[#allocation1 + $0x38] sm:$0xff pattern:$0x73625140]  ;;  %v1337_v22 = vld [vmem:[#allocation7 + $0x18] sm:$0xff]  ;;  %v1336_v24 = vld [vmem:[#allocation7 + $0x10] sm:$0xff] }
  0x2e   :  { %667 = vmatpush.bf16.msra.mxu2 %v1287_v27  ;;  %v118_v17 = vpack.c.bf16 %v102_v13, %v102_v13  ;;  %v1338_v21 = vld [vmem:[#allocation7 + $0x20] sm:$0xff]  ;;  %v1335_v26 = vld [vmem:[#allocation7 + $0x8] sm:$0xff]  ;;  %v1348_v36 = vld [vmem:[#allocation8 + $0x30] sm:$0xff] }
  0x2f   :  { %680 = vmatpush.bf16.msra.mxu3 %v1295_v28  ;;  %v1347_v38 = vld [vmem:[#allocation8 + $0x28] sm:$0xff] }
  0x30   :  { %642 = vmatpush.bf16.msra.mxu0 %v1270_v30 }
  0x31   :  { %655 = vmatpush.bf16.msra.mxu1 %v1278_v31  ;;  %v1334_v31 = vld [vmem:[#allocation7] sm:$0xff] }
  0x32   :  { %668 = vmatpush.bf16.msra.mxu2 %v1286_v32  ;;  %v1357_v32 = vld [vmem:[%s1565_s2] ss:$0 sm:$0xff] }
  0x33   :  { %681 = vmatpush.bf16.msra.mxu3 %v1294_v33  ;;  %643 = vmatmul.bf16.vlgmr.msra.gmra.mxu0 %v111_v43 }
  0x34   :  { %687 = vmatpush.bf16.msrb.mxu0 %v1309_v34  ;;  %656 = vmatmul.bf16.vlgmr.msra.gmra.mxu1 %v112_v45  ;;  %v1349_v34 = vld [vmem:[#allocation8 + $0x38] sm:$0xff] }
  0x35   :  { %700 = vmatpush.bf16.msrb.mxu1 %v1317_v35  ;;  %669 = vmatmul.bf16.vlgmr.msra.gmra.mxu2 %v113_v42  ;;  %v1345_v42 = vld [vmem:[#allocation8 + $0x18] sm:$0xff] }
  0x36   :  { %713 = vmatpush.bf16.msrb.mxu2 %v1325_v40  ;;  %682 = vmatmul.bf16.vlgmr.msra.gmra.mxu3 %v114_v44  ;;  %v1346_v40 = vld [vmem:[#allocation8 + $0x20] sm:$0xff] }
  0x37   :  { %726 = vmatpush.bf16.msrb.mxu3 %v1333_v41 }
  0x38   :  { %688 = vmatpush.bf16.msrb.mxu0 %v1308_v46 }
  0x39   :  { %701 = vmatpush.bf16.msrb.mxu1 %v1316_v47  ;;  %v1344_v47 = vld [vmem:[#allocation8 + $0x10] sm:$0xff] }
  0x3a   :  { %714 = vmatpush.bf16.msrb.mxu2 %v1324_v48 }
  0x3b   :  { %727 = vmatpush.bf16.msrb.mxu3 %v1332_v49 }
  0x3c   :  { %689 = vmatpush.bf16.msrb.mxu0 %v1307_v50 }
  0x3d   :  { %702 = vmatpush.bf16.msrb.mxu1 %v1315_v51 }
  0x3e   :  { %715 = vmatpush.bf16.msrb.mxu2 %v1323_v52 }
  0x3f   :  { %728 = vmatpush.bf16.msrb.mxu3 %v1331_v53 }
  0x40   :  { %690 = vmatpush.bf16.msrb.mxu0 %v1306_v54 }
  0x41   :  { %703 = vmatpush.bf16.msrb.mxu1 %v1314_v55 }
  0x42   :  { %716 = vmatpush.bf16.msrb.mxu2 %v1322_v56 }
  0x43   :  { %729 = vmatpush.bf16.msrb.mxu3 %v1330_v57 }
  0x44   :  { %691 = vmatpush.bf16.msrb.mxu0 %v1305_v58 }
  0x45   :  { %704 = vmatpush.bf16.msrb.mxu1 %v1313_v59 }
  0x46   :  { %717 = vmatpush.bf16.msrb.mxu2 %v1321_v60  ;;  %v1343_v60 = vld [vmem:[#allocation8 + $0x8] sm:$0xff] }
  0x47   :  { %730 = vmatpush.bf16.msrb.mxu3 %v1329_v61  ;;  %v1342_v61 = vld [vmem:[#allocation8] sm:$0xff] }
  0x48   :  { %692 = vmatpush.bf16.msrb.mxu0 %v1304_v62  ;;  %v1358_v62 = vld [vmem:[%s1567_s4] ss:$0 sm:$0xff]  ;;  %s1498_s4 = smov [#allocation10]  }
  0x49   :  { %705 = vmatpush.bf16.msrb.mxu1 %v1312_v63 }
  0x4a   :  { %718 = vmatpush.bf16.msrb.mxu2 %v1320_v0 }
  0x4b   :  { %731 = vmatpush.bf16.msrb.mxu3 %v1328_v1 }
  0x4c   :  { %693 = vmatpush.bf16.msrb.mxu0 %v1303_v2 }
  0x4d   :  { %706 = vmatpush.bf16.msrb.mxu1 %v1311_v3 }
  0x4e   :  { %719 = vmatpush.bf16.msrb.mxu2 %v1319_v4 }
  0x4f   :  { %732 = vmatpush.bf16.msrb.mxu3 %v1327_v5  ;;  %v1359_v5 = vld [vmem:[%s1569_s6] ss:$0 sm:$0xff]  ;;  %s935_s6 = sshll.u32 %s1498_s4, 4  ;;  %s936_s6 = int_to_ptr.vmem [resolvable:$true] %s935_s6 }
  0x50   :  { %694 = vmatpush.bf16.msrb.mxu0 %v1302_v6 }
  0x51   :  { %707 = vmatpush.bf16.msrb.mxu1 %v1310_v7 }
  0x52   :  { %720 = vmatpush.bf16.msrb.mxu2 %v1318_v8 }
  0x53   :  { %733 = vmatpush.bf16.msrb.mxu3 %v1326_v9  ;;  %695 = vmatmul.bf16.vlgmr.msrb.gmra.mxu0 %v115_v14 }
  0x54   :  { %708 = vmatmul.bf16.vlgmr.msrb.gmra.mxu1 %v116_v15  ;;  %811 = vmatpush.bf16.msra.mxu0 %v1341_v18 }
  0x55   :  { %721 = vmatmul.bf16.vlgmr.msrb.gmra.mxu2 %v117_v16  ;;  %896 = vmatpush.bf16.msra.mxu1 %v1349_v34 }
  0x56   :  { %734 = vmatmul.bf16.vlgmr.msrb.gmra.mxu3 %v118_v17 }
  0x58   :  { %812 = vmatpush.bf16.msra.mxu0 %v1340_v19 }
  0x59   :  { %897 = vmatpush.bf16.msra.mxu1 %v1348_v36 }
  0x5c   :  { %813 = vmatpush.bf16.msra.mxu0 %v1339_v20 }
  0x5d   :  { %898 = vmatpush.bf16.msra.mxu1 %v1347_v38 }
  0x60   :  { %814 = vmatpush.bf16.msra.mxu0 %v1338_v21 }
  0x61   :  { %899 = vmatpush.bf16.msra.mxu1 %v1346_v40 }
  0x64   :  { %815 = vmatpush.bf16.msra.mxu0 %v1337_v22 }
  0x65   :  { %900 = vmatpush.bf16.msra.mxu1 %v1345_v42 }
  0x68   :  { %816 = vmatpush.bf16.msra.mxu0 %v1336_v24 }
  0x69   :  { %901 = vmatpush.bf16.msra.mxu1 %v1344_v47 }
  0x6c   :  { %817 = vmatpush.bf16.msra.mxu0 %v1335_v26 }
  0x6d   :  { %902 = vmatpush.bf16.msra.mxu1 %v1343_v60 }
  0x70   :  { %818 = vmatpush.bf16.msra.mxu0 %v1334_v31 }
  0x71   :  { %903 = vmatpush.bf16.msra.mxu1 %v1342_v61 }
  0xb0   :  { %v644_v23 = vpop.f32.mrf.mxu0 }
  0xb1   :  { %v657_v25 = vpop.f32.mrf.mxu1  ;;  %v645_v37 = vadd.f32 %v1357_v32, %v644_v23 }
  0xb3   :  { %v658_v39 = vadd.f32 %v657_v25, %v645_v37 }
  0xb8   :  { %v670_v27 = vpop.f32.mrf.mxu2  ;;  %v646_v29 = vpop.f32.mrf.mxu0 }
  0xb9   :  { %v683_v28 = vpop.f32.mrf.mxu3  ;;  %v659_v30 = vpop.f32.mrf.mxu1  ;;  %v671_v41 = vadd.f32 %v670_v27, %v658_v39 }
  0xbb   :  { %v684_v43 = vadd.f32 %v683_v28, %v671_v41 }
  0xc0   :  { %v672_v33 = vpop.f32.mrf.mxu2 }
  0xc1   :  { %v685_v35 = vpop.f32.mrf.mxu3 }
  0xd0   :  { %v696_v44 = vpop.f32.mrf.mxu0 }
  0xd1   :  { %v709_v45 = vpop.f32.mrf.mxu1  ;;  %v697_v46 = vadd.f32 %v696_v44, %v684_v43 }
  0xd3   :  { %v710_v48 = vadd.f32 %v709_v45, %v697_v46 }
  0xd8   :  { %v722_v49 = vpop.f32.mrf.mxu2  ;;  %v698_v52 = vpop.f32.mrf.mxu0 }
  0xd9   :  { %v735_v50 = vpop.f32.mrf.mxu3  ;;  %v723_v51 = vadd.f32 %v722_v49, %v710_v48  ;;  %v711_v53 = vpop.f32.mrf.mxu1 }
  0xdb   :  { %v736_v54 = vadd.f32 %v735_v50, %v723_v51 }
  0xdd   :  { %vm739_vm0 = vcmp.gt.f32.partialorder %v736_v54, 0.0  ;;  %v740_v55 = vmul.f32 0.2, %v736_v54 }
  0xdf   :  { %v741_v56 = vsel %vm739_vm0, %v736_v54, %v740_v55 }
  0xe0   :  { %v742_v57 = vpack.c.bf16 %v741_v56, %v741_v56  ;;  %v724_v58 = vpop.f32.mrf.mxu2 }
  0xe1   :  { %v737_v59 = vpop.f32.mrf.mxu3 }
  0xe2   :  { %819 = vmatmul.bf16.vlgmr.msra.gmra.mxu0 %v742_v57 }
 0x15f   :  { %v820_v63 = vpop.f32.mrf.mxu0 }
 0x160   :  { %v821_v0 = vadd.f32 %v1358_v62, %v820_v63 }
 0x162   :  { %vm824_vm1 = vcmp.gt.f32.partialorder %v821_v0, 0.0  ;;  %v825_v1 = vmul.f32 0.2, %v821_v0 }
 0x164   :  { %v826_v2 = vsel %vm824_vm1, %v821_v0, %v825_v1 }
 0x165   :  { %v827_v3 = vpack.c.bf16 %v826_v2, %v826_v2 }
 0x167   :  { %v822_v4 = vpop.f32.mrf.mxu0  ;;  %904 = vmatmul.bf16.vlgmr.msra.gmra.mxu1 %v827_v3 }
 0x1e4   :  { %v905_v6 = vpop.f32.mrf.mxu1 }
 0x1e5   :  { %v906_v7 = vadd.f32 %v1359_v5, %v905_v6 }
 0x1e7   :  { %v1269_v8 = vmul.f32 -1.442695, %v906_v7 }
 0x1e9   :  { %1360 = vpow2.f32 %v1269_v8 }
 0x1ec   :  { %v907_v9 = vpop.f32.mrf.mxu1 }
 0x1ef   :  { %v1361_v10 = vpop.eup %1360 }
 0x1f0   :  { %v912_v11 = vadd.f32 1.0, %v1361_v10 }
 0x1f2   :  { %1362 = vrcp.f32 %v912_v11  ;;  %v924_v15 = vand.u32 2147483648, %v912_v11  ;;  %v922_v17 = vand.u32 2147483647, %v912_v11  ;;  %vm918_vm3 = vweird.f32 %v912_v11 }
 0x1f4   :  { %v925_v19 = vor.u32 1.1754944e-38, %v924_v15  ;;  %vm923_vm5 = vcmp.eq.f32.partialorder %v922_v17, 8.507059e+37 }
 0x1f8   :  { %v1363_v12 = vpop.eup %1362 }
 0x1f9   :  { %v914_v13 = vmul.f32 %v1363_v12, %v912_v11  ;;  %vm919_vm2 = vweird.f32 %v1363_v12 }
 0x1fa   :  { %vm920_vm4 = vmor %vm918_vm3, %vm919_vm2 }
 0x1fb   :  { %v915_v14 = vsub.f32 1.0, %v914_v13 }
 0x1fd   :  { %v916_v16 = vmul.f32 %v1363_v12, %v915_v14 }
 0x1ff   :  { %v917_v18 = vadd.f32 %v1363_v12, %v916_v16 }
 0x201   :  { %v921_v20 = vsel %vm920_vm4, %v1363_v12, %v917_v18 }
 0x202   :  { %v926_v21 = vsel %vm923_vm5, %v925_v19, %v921_v20 }
 0x203   :  { %v928_v22 = vpack.c.bf16 %v926_v21, %v926_v21 }
 0x205   :  { %929 = vst [vmem:[#allocation10] sm:$0x1] %v928_v22 }
 0x206   :  { %940 = dma.vmem_to_hbm [thread:$0]  %s936_s6, 16, %s938_s26, [#allocation4]  }
 0x207   :  { %1490 = dma.done.wait [#allocation4], 16  }
 0x208   :  { %1491 = vsyncadd [#allocation4], 4294967280 }
 0x209   :  { %945 = vsyncpa [#allocation3], 1 }
 0x20a   :  { %946 = vsyncpa [#allocation6], 1 }
 0x20b   :  { %947 = vsyncpa [#allocation9], 1 }
 0x20c   :  { %948 = vsyncpa [#allocation4], 1 }

</bundles_post_ra>
